<compile_context>
chip_gen: v5e
topology: v5e:2x2
jax: 0.10.0
libtpu: 0.0.40
codegen_flags: <defaults>
</compile_context>

<pallas_src>
import jax
import jax.numpy as jnp
from jax.experimental import pallas as pl
from jax.experimental.pallas import tpu as pltpu

# ---------------- model hyper-params (PyTorch defaults) ----------------
N_USER = 100
N_ITEM = 200
N_FACTOR_MLP = 32
HIDDEN = (64, 32, 16)
OUT_DIM = 1          # n_class == 2
BATCH = 16

TB_MAX = 1024        # max batch-tile for large B (per-step overhead amortised)


def _round_up(x, m):
    return (x + m - 1) // m * m


# ---- packed-parameter layout constants ----
U_PAD = _round_up(N_USER, 8)          # 104 (pad user table to sublane multiple)
I_PAD = _round_up(N_ITEM, 8)          # 200
EMB_ROWS = U_PAD + I_PAD              # 304: rows [0,U_PAD) user, [U_PAD,..) item
D_IN = 2 * N_FACTOR_MLP               # 64 lanes: [0,32) user emb, [32,64) item emb

W1_ROW = 0                            # rows [0,64)    : W1 (64 -> 64)
W2_ROW = W1_ROW + D_IN                # rows [64,128)  : W2 (64 -> 32)
W3_ROW = W2_ROW + HIDDEN[0]           # rows [128,160) : W3 (32 -> 16)
B_ROW = W3_ROW + HIDDEN[1]            # rows [160,165) : b1,b2,b3,W4^T,b4
P_ROWS = _round_up(B_ROW + 5, 8)      # 168 total rows in the param slab


def ncf_mlp_kernel(idx_ref, emb_ref, p_ref, out_ref):
    tb = idx_ref.shape[0]
    idx = idx_ref[...]                                     # (tb, 2) int32
    xu = idx[:, 0:1]                                       # user row index
    xi = idx[:, 1:2]                                       # item row index (+U_PAD, applied in wrapper)

    # ---- fused embedding gather + concat via one two-hot MXU matmul ----
    iota = jax.lax.broadcasted_iota(jnp.int32, (tb, EMB_ROWS), 1)
    two_hot = jnp.logical_or(iota == xu, iota == xi).astype(jnp.float32)
    # HIGHEST precision -> exact reconstruction of the f32 embedding rows.
    h = jnp.dot(two_hot, emb_ref[...],
                preferred_element_type=jnp.float32,
                precision=jax.lax.Precision.HIGHEST)       # (tb, 64) = [h_u | h_i]

    # ---- unpack params from the single slab (all static, aligned slices) ----
    w1 = p_ref[W1_ROW:W1_ROW + D_IN, 0:HIDDEN[0]]          # (64, 64)
    w2 = p_ref[W2_ROW:W2_ROW + HIDDEN[0], 0:HIDDEN[1]]     # (64, 32)
    w3 = p_ref[W3_ROW:W3_ROW + HIDDEN[1], 0:HIDDEN[2]]     # (32, 16)
    b1 = p_ref[B_ROW + 0:B_ROW + 1, 0:HIDDEN[0]]
    b2 = p_ref[B_ROW + 1:B_ROW + 2, 0:HIDDEN[1]]
    b3 = p_ref[B_ROW + 2:B_ROW + 3, 0:HIDDEN[2]]
    w4 = p_ref[B_ROW + 3:B_ROW + 4, 0:HIDDEN[2]]           # output weight as a row
    b4 = p_ref[B_ROW + 4:B_ROW + 5, 0:OUT_DIM]

    # ---- MLP layers (single L1 dot: concat was fused into the gather) ----
    h = jnp.maximum(jnp.dot(h, w1, preferred_element_type=jnp.float32) + b1, 0.0)
    h = jnp.maximum(jnp.dot(h, w2, preferred_element_type=jnp.float32) + b2, 0.0)
    h = jnp.maximum(jnp.dot(h, w3, preferred_element_type=jnp.float32) + b3, 0.0)

    # ---- output layer, lane-dense: (1,16) x (tb,16)^T -> (1, tb) ----
    logits = jax.lax.dot_general(
        w4, h, (((1,), (1,)), ((), ())),
        preferred_element_type=jnp.float32) + b4            # (1, tb)
    out_ref[0] = logits


def _choose_tile(B):
    """Batch tile: one grid step for small B, >=2 balanced tiles otherwise
    (keeps both v7x TensorCores busy), capped at TB_MAX."""
    if B <= 128:
        return B
    half = _round_up((B + 1) // 2, 8)
    return min(TB_MAX, half)


def ncf_mlp_forward(x_u, x_i, emb_pack, ppack):
    """x_u, x_i: (B, 1) or (B,) int indices. Returns (B, 1) float32 logits."""
    B = x_u.shape[0]
    xu = x_u.reshape(B).astype(jnp.int32)
    xi = x_i.reshape(B).astype(jnp.int32) + U_PAD          # offset into item rows
    idx = jnp.stack([xu, xi], axis=1)                      # (B, 2)

    TB = _choose_tile(B)
    B_pad = _round_up(B, TB)
    if B_pad != B:
        idx = jnp.pad(idx, ((0, B_pad - B), (0, 0)))       # index 0 = harmless pad
    n_tiles = B_pad // TB

    out = pl.pallas_call(
        ncf_mlp_kernel,
        out_shape=jax.ShapeDtypeStruct((n_tiles, 1, TB), jnp.float32),
        grid=(n_tiles,),
        in_specs=[
            pl.BlockSpec((TB, 2), lambda i: (i, 0)),        # fused (user,item) indices
            pl.BlockSpec(emb_pack.shape, lambda i: (0, 0)), # packed embedding slab
            pl.BlockSpec(ppack.shape, lambda i: (0, 0)),    # packed weights+biases
        ],
        out_specs=pl.BlockSpec((1, 1, TB), lambda i: (i, 0, 0)),
        compiler_params=pltpu.CompilerParams(
            dimension_semantics=("parallel",) if n_tiles > 1 else ("arbitrary",)),
    )(idx, emb_pack, ppack)

    # (n_tiles, 1, TB) with batch on lanes -> (B, 1)
    return out.reshape(B_pad, 1)[:B]


# ---------------- deterministic parameter init ----------------
def xavier_uniform(key, shape):
    fan_in, fan_out = shape
    limit = (6.0 / (fan_in + fan_out)) ** 0.5
    return jax.random.uniform(key, shape, jnp.float32, -limit, limit)


def init_params(key):
    ks = jax.random.split(key, 10)
    u_emb = xavier_uniform(ks[0], (N_USER, N_FACTOR_MLP))
    i_emb = xavier_uniform(ks[1], (N_ITEM, N_FACTOR_MLP))
    dims = [(2 * N_FACTOR_MLP, HIDDEN[0]),
            (HIDDEN[0], HIDDEN[1]),
            (HIDDEN[1], HIDDEN[2]),
            (HIDDEN[2], OUT_DIM)]
    layers = []
    for n, (din, dout) in enumerate(dims):
        w = xavier_uniform(ks[2 + 2 * n], (din, dout))
        b = jax.random.uniform(ks[3 + 2 * n], (1, dout), jnp.float32, -0.1, 0.1)
        layers.append((w, b))
    return u_emb, i_emb, layers


def pack_params(u_emb, i_emb, layers):
    """Pack embeddings and all MLP params into 2 dense VMEM-friendly slabs."""
    (w1, b1), (w2, b2), (w3, b3), (w4, b4) = layers

    # Embedding slab: user table in lanes 0:32, item table in lanes 32:64,
    # so a single two-hot matmul yields concat([h_u, h_i]) directly.
    emb_pack = jnp.zeros((EMB_ROWS, D_IN), jnp.float32)
    emb_pack = emb_pack.at[0:N_USER, 0:N_FACTOR_MLP].set(u_emb)
    emb_pack = emb_pack.at[U_PAD:U_PAD + N_ITEM, N_FACTOR_MLP:D_IN].set(i_emb)

    # Single param slab: W1 / W2 / W3 stacked by rows, biases + W4 row on top.
    ppack = jnp.zeros((P_ROWS, D_IN), jnp.float32)
    ppack = ppack.at[W1_ROW:W1_ROW + D_IN, 0:HIDDEN[0]].set(w1)
    ppack = ppack.at[W2_ROW:W2_ROW + HIDDEN[0], 0:HIDDEN[1]].set(w2)
    ppack = ppack.at[W3_ROW:W3_ROW + HIDDEN[1], 0:HIDDEN[2]].set(w3)
    ppack = ppack.at[B_ROW + 0, 0:HIDDEN[0]].set(b1.reshape(-1))
    ppack = ppack.at[B_ROW + 1, 0:HIDDEN[1]].set(b2.reshape(-1))
    ppack = ppack.at[B_ROW + 2, 0:HIDDEN[2]].set(b3.reshape(-1))
    ppack = ppack.at[B_ROW + 3, 0:HIDDEN[2]].set(w4.reshape(-1))   # W4^T as a row
    ppack = ppack.at[B_ROW + 4, 0:OUT_DIM].set(b4.reshape(-1))
    return emb_pack, ppack


def reference_forward(x_u, x_i, u_emb, i_emb, layers):
    h_u = jnp.take(u_emb, x_u.reshape(-1), axis=0)
    h_i = jnp.take(i_emb, x_i.reshape(-1), axis=0)
    h = jnp.concatenate([h_u, h_i], axis=-1)
    for n, (w, b) in enumerate(layers):
        h = jnp.dot(h, w, precision=jax.lax.Precision.HIGHEST) + b
        if n < len(layers) - 1:
            h = jnp.maximum(h, 0.0)
    return h


if __name__ == "__main__":
    key = jax.random.PRNGKey(0)
    k_param, k_u, k_i = jax.random.split(key, 3)

    u_emb, i_emb, layers = init_params(k_param)
    emb_pack, ppack = pack_params(u_emb, i_emb, layers)

    # user / item index inputs, shape (B, 1) as in the torch module
    x_u = jax.random.randint(k_u, (BATCH, 1), 0, N_USER, dtype=jnp.int32)
    x_i = jax.random.randint(k_i, (BATCH, 1), 0, N_ITEM, dtype=jnp.int32)

    logits = ncf_mlp_forward(x_u, x_i, emb_pack, ppack)
    logits = jax.block_until_ready(logits)

    ref = reference_forward(x_u, x_i, u_emb, i_emb, layers)

    assert logits.shape == (BATCH, OUT_DIM)
    assert jnp.allclose(logits, ref, atol=1e-4, rtol=1e-4), (
        float(jnp.max(jnp.abs(logits - ref))))

    print("KERNEL_OK")
</pallas_src>

<mosaic_0001>
module attributes {stable_mosaic.version = 11 : i64} {
  func.func @ncf_mlp_kernel(%arg0: i32, %arg1: memref<16x2xi32, #tpu.memory_space<vmem>>, %arg2: memref<304x64xf32, #tpu.memory_space<vmem>>, %arg3: memref<168x64xf32, #tpu.memory_space<vmem>>, %arg4: memref<1x1x16xf32, #tpu.memory_space<vmem>>) attributes {dimension_semantics = [#tpu.dimension_semantics<arbitrary>], iteration_bounds = array<i64: 1>, scalar_prefetch = 0 : i64, scratch_operands = 0 : i64, tpu.core_type = #tpu.core_type<tc>, window_params = [{transform_indices = @transform_0, window_bounds = array<i64: 16, 2>}, {pipeline_mode = #tpu.pipeline_mode<synchronous>, transform_indices = @transform_1, window_bounds = array<i64: 304, 64>}, {pipeline_mode = #tpu.pipeline_mode<synchronous>, transform_indices = @transform_2, window_bounds = array<i64: 168, 64>}, {transform_indices = @transform_3, window_bounds = array<i64: 1, 1, 16>}]} {
    %c0 = arith.constant 0 : index
    %c0_0 = arith.constant 0 : index
    %0 = vector.load %arg1[%c0, %c0_0] : memref<16x2xi32, #tpu.memory_space<vmem>>, vector<16x2xi32>
    %1 = vector.extract_strided_slice %0 {offsets = [0, 0], sizes = [16, 1], strides = [1, 1]} : vector<16x2xi32> to vector<16x1xi32>
    %2 = vector.extract_strided_slice %0 {offsets = [0, 1], sizes = [16, 1], strides = [1, 1]} : vector<16x2xi32> to vector<16x1xi32>
    %3 = tpu.iota {dimensions = array<i32: 1>} : vector<16x304xi32>
    %4 = vector.broadcast %1 : vector<16x1xi32> to vector<16x304xi32>
    %5 = arith.cmpi eq, %3, %4 : vector<16x304xi32>
    %6 = vector.broadcast %2 : vector<16x1xi32> to vector<16x304xi32>
    %7 = arith.cmpi eq, %3, %6 : vector<16x304xi32>
    %8 = arith.ori %5, %7 : vector<16x304xi1>
    %9 = arith.extui %8 : vector<16x304xi1> to vector<16x304xi32>
    %10 = arith.sitofp %9 : vector<16x304xi32> to vector<16x304xf32>
    %c0_1 = arith.constant 0 : index
    %c0_2 = arith.constant 0 : index
    %11 = vector.load %arg2[%c0_1, %c0_2] : memref<304x64xf32, #tpu.memory_space<vmem>>, vector<304x64xf32>
    %cst = arith.constant dense<0.000000e+00> : vector<16x64xf32>
    %12 = tpu.matmul %10, %11, %cst {dimension_numbers = #tpu.dot_dimension_numbers<[1], [0], [0], [1], [0, 0, 1, 1], [], []>, precision = #tpu.contract_precision<fp32>} : vector<16x304xf32>, vector<304x64xf32>, vector<16x64xf32> -> vector<16x64xf32>
    %c0_3 = arith.constant 0 : index
    %c0_4 = arith.constant 0 : index
    %13 = vector.load %arg3[%c0_3, %c0_4] : memref<168x64xf32, #tpu.memory_space<vmem>>, vector<64x64xf32>
    %c64 = arith.constant 64 : index
    %c0_5 = arith.constant 0 : index
    %14 = vector.load %arg3[%c64, %c0_5] : memref<168x64xf32, #tpu.memory_space<vmem>>, vector<64x32xf32>
    %c128 = arith.constant 128 : index
    %c0_6 = arith.constant 0 : index
    %15 = vector.load %arg3[%c128, %c0_6] : memref<168x64xf32, #tpu.memory_space<vmem>>, vector<32x16xf32>
    %c160 = arith.constant 160 : index
    %c0_7 = arith.constant 0 : index
    %16 = vector.load %arg3[%c160, %c0_7] : memref<168x64xf32, #tpu.memory_space<vmem>>, vector<1x64xf32>
    %c161 = arith.constant 161 : index
    %c0_8 = arith.constant 0 : index
    %17 = vector.load %arg3[%c161, %c0_8] : memref<168x64xf32, #tpu.memory_space<vmem>>, vector<1x32xf32>
    %c162 = arith.constant 162 : index
    %c0_9 = arith.constant 0 : index
    %18 = vector.load %arg3[%c162, %c0_9] : memref<168x64xf32, #tpu.memory_space<vmem>>, vector<1x16xf32>
    %c163 = arith.constant 163 : index
    %c0_10 = arith.constant 0 : index
    %19 = vector.load %arg3[%c163, %c0_10] : memref<168x64xf32, #tpu.memory_space<vmem>>, vector<1x16xf32>
    %c164 = arith.constant 164 : index
    %c0_11 = arith.constant 0 : index
    %20 = vector.load %arg3[%c164, %c0_11] : memref<168x64xf32, #tpu.memory_space<vmem>>, vector<1x1xf32>
    %cst_12 = arith.constant dense<0.000000e+00> : vector<16x64xf32>
    %21 = tpu.matmul %12, %13, %cst_12 {dimension_numbers = #tpu.dot_dimension_numbers<[1], [0], [0], [1], [0, 0, 1, 1], [], []>} : vector<16x64xf32>, vector<64x64xf32>, vector<16x64xf32> -> vector<16x64xf32>
    %22 = vector.broadcast %16 : vector<1x64xf32> to vector<16x64xf32>
    %23 = arith.addf %21, %22 : vector<16x64xf32>
    %cst_13 = arith.constant 0.000000e+00 : f32
    %24 = vector.broadcast %cst_13 : f32 to vector<16x64xf32>
    %25 = arith.maximumf %23, %24 : vector<16x64xf32>
    %cst_14 = arith.constant dense<0.000000e+00> : vector<16x32xf32>
    %26 = tpu.matmul %25, %14, %cst_14 {dimension_numbers = #tpu.dot_dimension_numbers<[1], [0], [0], [1], [0, 0, 1, 1], [], []>} : vector<16x64xf32>, vector<64x32xf32>, vector<16x32xf32> -> vector<16x32xf32>
    %27 = vector.broadcast %17 : vector<1x32xf32> to vector<16x32xf32>
    %28 = arith.addf %26, %27 : vector<16x32xf32>
    %cst_15 = arith.constant 0.000000e+00 : f32
    %29 = vector.broadcast %cst_15 : f32 to vector<16x32xf32>
    %30 = arith.maximumf %28, %29 : vector<16x32xf32>
    %cst_16 = arith.constant dense<0.000000e+00> : vector<16x16xf32>
    %31 = tpu.matmul %30, %15, %cst_16 {dimension_numbers = #tpu.dot_dimension_numbers<[1], [0], [0], [1], [0, 0, 1, 1], [], []>} : vector<16x32xf32>, vector<32x16xf32>, vector<16x16xf32> -> vector<16x16xf32>
    %32 = vector.broadcast %18 : vector<1x16xf32> to vector<16x16xf32>
    %33 = arith.addf %31, %32 : vector<16x16xf32>
    %cst_17 = arith.constant 0.000000e+00 : f32
    %34 = vector.broadcast %cst_17 : f32 to vector<16x16xf32>
    %35 = arith.maximumf %33, %34 : vector<16x16xf32>
    %cst_18 = arith.constant dense<0.000000e+00> : vector<1x16xf32>
    %36 = tpu.matmul %19, %35, %cst_18 {dimension_numbers = #tpu.dot_dimension_numbers<[1], [1], [0], [0], [0, 0, 1, 0], [], []>} : vector<1x16xf32>, vector<16x16xf32>, vector<1x16xf32> -> vector<1x16xf32>
    %37 = vector.broadcast %20 : vector<1x1xf32> to vector<1x16xf32>
    %38 = arith.addf %36, %37 : vector<1x16xf32>
    %c0_19 = arith.constant 0 : index
    %c0_20 = arith.constant 0 : index
    %c0_21 = arith.constant 0 : index
    %39 = vector.load %arg4[%c0_19, %c0_20, %c0_21] : memref<1x1x16xf32, #tpu.memory_space<vmem>>, vector<1x1x16xf32>
    %40 = vector.shape_cast %39 : vector<1x1x16xf32> to vector<1x16xf32>
    %41 = vector.shape_cast %38 : vector<1x16xf32> to vector<1x1x16xf32>
    tpu.vector_store %arg4[%c0_19, %c0_20, %c0_21], %41 {strides = array<i32>} : memref<1x1x16xf32, #tpu.memory_space<vmem>>, vector<1x1x16xf32>,
    return
  }
  func.func @transform_0(%arg0: i32) -> (i32, i32) {
    %c0_i32 = arith.constant 0 : i32
    %c0_i32_0 = arith.constant 0 : i32
    return %arg0, %c0_i32 : i32, i32
  }
  func.func @transform_1(%arg0: i32) -> (i32, i32) {
    %c0_i32 = arith.constant 0 : i32
    %c0_i32_0 = arith.constant 0 : i32
    %c0_i32_1 = arith.constant 0 : i32
    return %c0_i32, %c0_i32_0 : i32, i32
  }
  func.func @transform_2(%arg0: i32) -> (i32, i32) {
    %c0_i32 = arith.constant 0 : i32
    %c0_i32_0 = arith.constant 0 : i32
    %c0_i32_1 = arith.constant 0 : i32
    return %c0_i32, %c0_i32_0 : i32, i32
  }
  func.func @transform_3(%arg0: i32) -> (i32, i32, i32) {
    %c0_i32 = arith.constant 0 : i32
    %c0_i32_0 = arith.constant 0 : i32
    %c0_i32_1 = arith.constant 0 : i32
    return %arg0, %c0_i32, %c0_i32_0 : i32, i32, i32
  }
}

</mosaic_0001>

<bundles_post_ra>
// kernel: tpu_custom_call.1
= control target key start
LH: loop header
LB: loop body
LE: loop exit
PB: predicated region body
PF: predicated region fallthrough
CT: control target
= control target key end

     0   :  { %v2283_v3 = vmov 0   ;;  %s2274_s0 = inlined_call_operand.vmem [shape: s32[16,2], index: 0, kind: input, shape index: {}]   ;;  %s2275_s1 = inlined_call_operand.vmem [shape: f32[304,64], index: 1, kind: input, shape index: {}]   ;;  %s2276_s2 = inlined_call_operand.vmem [shape: f32[168,64], index: 2, kind: input, shape index: {}]   ;;  %s2277_s3 = inlined_call_operand.hbm [shape: f32[1,1,16], index: 3, kind: output, shape index: {}]  }
   0x1   :  { %v16_v0 = vld [vmem:[%s2274_s0 + $0x8] sm:$0xff]  ;;  %v15_v1 = vld [vmem:[%s2274_s0] sm:$0xff]  ;;  %v78_v2 = vld [vmem:[%s2275_s1 + $0x78] sm:$0xff]  ;;  %1314 = vset.pattern.permute.xlu1 %v2283_v3  ;;  %1312 = vset.pattern.permute.xlu0 %v2283_v3 }
   0x2   :  { %v1383_v4 = vand.u32 4294901760, %v78_v2  ;;  %v77_v5 = vld [vmem:[%s2275_s1 + $0x70] sm:$0xff]  ;;  %v76_v6 = vld [vmem:[%s2275_s1 + $0x68] sm:$0xff]  ;;  %v75_v7 = vld [vmem:[%s2275_s1 + $0x60] sm:$0xff]  ;;  %25 = vperm.xlu1 %1314, %v16_v0   ;;  %22 = vperm.xlu0 %1312, %v15_v1  }
   0x3   :  { %v1394_v8 = vand.u32 4294901760, %v77_v5  ;;  %v1396_v9 = vand.u32 4294901760, %v76_v6  ;;  %v1398_v10 = vand.u32 4294901760, %v75_v7  ;;  %v74_v11 = vld [vmem:[%s2275_s1 + $0x58] sm:$0xff]  ;;  %v73_v12 = vld [vmem:[%s2275_s1 + $0x50] sm:$0xff]  ;;  %v72_v13 = vld [vmem:[%s2275_s1 + $0x48] sm:$0xff]  ;;  %1316 = vset.pattern.permute.xlu2 %v2283_v3 }
   0x4   :  { %v1410_v14 = vsub.f32 %v78_v2, %v1383_v4  ;;  %322 = vmatpush.msra.mxu3 %v1383_v4  ;;  %v1413_v15 = vand.u32 4294901760, %v74_v11  ;;  %109 = vmatpush.msra.mxu0 %v1383_v4  ;;  %v1416_v16 = vand.u32 4294901760, %v73_v12  ;;  %v1418_v17 = vand.u32 4294901760, %v72_v13  ;;  %v71_v18 = vld [vmem:[%s2275_s1 + $0x40] sm:$0xff] }
   0x5   :  { %v1424_v19 = vsub.f32 %v77_v5, %v1394_v8  ;;  %v1427_v20 = vsub.f32 %v76_v6, %v1396_v9  ;;  %v1430_v21 = vsub.f32 %v75_v7, %v1398_v10  ;;  %v1439_v24 = vand.u32 4294901760, %v71_v18 }
   0x6   :  { %v159_v22 = vand.u32 4294901760, %v1410_v14  ;;  %264 = vmatpush.msra.mxu2 %v1410_v14  ;;  %324 = vmatpush.msra.mxu3 %v1394_v8  ;;  %v1437_v23 = vsub.f32 %v74_v11, %v1413_v15  ;;  %v1445_v28 = vsub.f32 %v73_v12, %v1416_v16  ;;  %v1454_v30 = vsub.f32 %v72_v13, %v1418_v17 }
   0x7   :  { %v165_v25 = vand.u32 4294901760, %v1424_v19  ;;  %v171_v26 = vand.u32 4294901760, %v1427_v20  ;;  %v2290_v27 = vand.u32 4294901760, %v1430_v21  ;;  %111 = vmatpush.msra.mxu0 %v1394_v8 }
   0x8   :  { %v160_v29 = vsub.f32 %v1410_v14, %v159_v22  ;;  %267 = vmatpush.msra.mxu2 %v1424_v19  ;;  %326 = vmatpush.msra.mxu3 %v1396_v9 }
   0x9   :  { %8 = vsyncpa [#allocation3], 0  ;;  %v166_v31 = vsub.f32 %v1424_v19, %v165_v25  ;;  %v172_v32 = vsub.f32 %v1427_v20, %v171_v26  ;;  %v2287_v33 = vand.u32 4294901760, %v1437_v23  ;;  %113 = vmatpush.msra.mxu0 %v1396_v9  ;;  %v70_v34 = vld [vmem:[%s2275_s1 + $0x38] sm:$0xff]  ;;  %v1470_v36 = vsub.f32 %v71_v18, %v1439_v24  ;;  %v69_v37 = vld [vmem:[%s2275_s1 + $0x30] sm:$0xff]  ;;  %s1351_s27 = smov [#allocation2]  }
   0xa   :  { %v161_v35 = vand.u32 4294901760, %v160_v29  ;;  %270 = vmatpush.msra.mxu2 %v1427_v20  ;;  %328 = vmatpush.msra.mxu3 %v1398_v10  ;;  %v68_v38 = vld [vmem:[%s2275_s1 + $0x28] sm:$0xff]  ;;  %v1348_v39 = vmov 1   ;;  %v178_v41 = vsub.f32 %v1430_v21, %v2290_v27  ;;  %v2286_v42 = vand.u32 4294901760, %v1445_v28  ;;  %v67_v45 = vld [vmem:[%s2275_s1 + $0x20] sm:$0xff]  ;;  %v66_v50 = vld [vmem:[%s2275_s1 + $0x18] sm:$0xff] }
   0xb   :  { %1315 = vset.pattern.permute.xlu1 %v1348_v39  ;;  %1313 = vset.pattern.permute.xlu0 %v1348_v39  ;;  %v167_v40 = vand.u32 4294901760, %v166_v31  ;;  %v2284_v43 = vand.u32 4294901760, %v1454_v30  ;;  %v1483_v44 = vand.u32 4294901760, %v70_v34  ;;  %v173_v46 = vand.u32 4294901760, %v172_v32  ;;  %v65_v57 = vld [vmem:[%s2275_s1 + $0x10] sm:$0xff]  ;;  %v64_v63 = vld [vmem:[%s2275_s1 + $0x8] sm:$0xff] }
   0xc   :  { %37 = vperm.xlu1 %1315, %v16_v0   ;;  %34 = vperm.xlu0 %1313, %v15_v1   ;;  %v184_v47 = vsub.f32 %v1437_v23, %v2287_v33  ;;  %v1492_v48 = vand.u32 4294901760, %v69_v37  ;;  %v1494_v49 = vand.u32 4294901760, %v68_v38  ;;  %v2282_v51 = vand.u32 4294901760, %v1470_v36  ;;  %v63_v7 = vld [vmem:[%s2275_s1] sm:$0xff]  ;;  %v94_v11 = vld [vmem:[%s2275_s1 + $0xf8] sm:$0xff]  ;;  %v93_v18 = vld [vmem:[%s2275_s1 + $0xf0] sm:$0xff] }
   0xd   :  { %162 = vmatpush.msra.mxu1 %v161_v35  ;;  %273 = vmatpush.msra.mxu2 %v1430_v21  ;;  %v1503_v52 = vsub.f32 %v70_v34, %v1483_v44  ;;  %v179_v53 = vand.u32 4294901760, %v178_v41  ;;  %v190_v54 = vsub.f32 %v1445_v28, %v2286_v42  ;;  %v1512_v56 = vand.u32 4294901760, %v67_v45  ;;  %v92_v29 = vld [vmem:[%s2275_s1 + $0xe8] sm:$0xff]  ;;  %s1259_s28 = sshll.u32 %s1351_s27, 4  ;;  %s1261_s4 = sshll.u32 %s2277_s3, 4  ;;  %s1260_s28 = int_to_ptr.vmem [resolvable:$true] %s1259_s28  ;;  %s1262_s4 = int_to_ptr.hbm [resolvable:$true] %s1261_s4 }
   0xe   :  { %330 = vmatpush.msra.mxu3 %v1413_v15  ;;  %115 = vmatpush.msra.mxu0 %v1398_v10  ;;  %v1510_v55 = vsub.f32 %v69_v37, %v1492_v48  ;;  %v1519_v58 = vand.u32 4294901760, %v66_v50  ;;  %v185_v59 = vand.u32 4294901760, %v184_v47  ;;  %v196_v60 = vsub.f32 %v1454_v30, %v2284_v43 }
   0xf   :  { %168 = vmatpush.msra.mxu1 %v167_v40  ;;  %276 = vmatpush.msra.mxu2 %v1437_v23  ;;  %v2280_v61 = vand.u32 4294901760, %v1503_v52  ;;  %v1527_v62 = vsub.f32 %v68_v38, %v1494_v49  ;;  %v202_v0 = vsub.f32 %v1470_v36, %v2282_v51  ;;  %v1537_v1 = vand.u32 4294901760, %v65_v57  ;;  %v91_v40 = vld [vmem:[%s2275_s1 + $0xe0] sm:$0xff] }
  0x10   :  { %332 = vmatpush.msra.mxu3 %v1416_v16  ;;  %117 = vmatpush.msra.mxu0 %v1413_v15  ;;  %v191_v2 = vand.u32 4294901760, %v190_v54  ;;  %v2279_v5 = vand.u32 4294901760, %v1510_v55  ;;  %v1542_v6 = vsub.f32 %v67_v45, %v1512_v56  ;;  %v1553_v12 = vsub.f32 %v66_v50, %v1519_v58 }
  0x11   :  { %174 = vmatpush.msra.mxu1 %v173_v46  ;;  %279 = vmatpush.msra.mxu2 %v1445_v28  ;;  %v1555_v13 = vand.u32 4294901760, %v64_v63  ;;  %v197_v31 = vand.u32 4294901760, %v196_v60  ;;  %v208_v32 = vsub.f32 %v1503_v52, %v2280_v61  ;;  %v2278_v34 = vand.u32 4294901760, %v1527_v62 }
  0x12   :  { %334 = vmatpush.msra.mxu3 %v1418_v17  ;;  %119 = vmatpush.msra.mxu0 %v1416_v16  ;;  %v203_v35 = vand.u32 4294901760, %v202_v0  ;;  %v1571_v37 = vsub.f32 %v65_v57, %v1537_v1  ;;  %v1573_v38 = vand.u32 4294901760, %v63_v7  ;;  %v1575_v39 = vand.u32 4294901760, %v94_v11  ;;  %v90_v57 = vld [vmem:[%s2275_s1 + $0xd8] sm:$0xff] }
  0x13   :  { %180 = vmatpush.msra.mxu1 %v179_v53  ;;  %282 = vmatpush.msra.mxu2 %v1454_v30  ;;  %v214_v41 = vsub.f32 %v1510_v55, %v2279_v5  ;;  %v2281_v45 = vand.u32 4294901760, %v1542_v6  ;;  %v1585_v46 = vand.u32 4294901760, %v93_v18  ;;  %v1587_v47 = vand.u32 4294901760, %v92_v29 }
  0x14   :  { %336 = vmatpush.msra.mxu3 %v1439_v24  ;;  %121 = vmatpush.msra.mxu0 %v1418_v17  ;;  %v2285_v50 = vand.u32 4294901760, %v1553_v12  ;;  %v1593_v53 = vsub.f32 %v64_v63, %v1555_v13  ;;  %v1596_v54 = vsub.f32 %v94_v11, %v1575_v39  ;;  %v220_v60 = vsub.f32 %v1527_v62, %v2278_v34 }
  0x15   :  { %186 = vmatpush.msra.mxu1 %v185_v59  ;;  %285 = vmatpush.msra.mxu2 %v1470_v36  ;;  %v209_v59 = vand.u32 4294901760, %v208_v32  ;;  %v1606_v0 = vsub.f32 %v93_v18, %v1585_v46  ;;  %v1608_v63 = vand.u32 4294901760, %v91_v40  ;;  %v89_v32 = vld [vmem:[%s2275_s1 + $0xd0] sm:$0xff]  ;;  %v215_v18 = vand.u32 4294901760, %v214_v41 }
  0x16   :  { %338 = vmatpush.msra.mxu3 %v1483_v44  ;;  %123 = vmatpush.msra.mxu0 %v1439_v24  ;;  %v2288_v11 = vand.u32 4294901760, %v1596_v54  ;;  %v226_v34 = vsub.f32 %v1542_v6, %v2281_v45  ;;  %v1627_v5 = vand.u32 4294901760, %v90_v57  ;;  %v221_v41 = vand.u32 4294901760, %v220_v60 }
  0x17   :  { %192 = vmatpush.msra.mxu1 %v191_v2  ;;  %288 = vmatpush.msra.mxu2 %v1503_v52  ;;  %v1613_v2 = vsub.f32 %v63_v7, %v1573_v38  ;;  %v2289_v7 = vand.u32 4294901760, %v1571_v37  ;;  %v2291_v61 = vand.u32 4294901760, %v1606_v0  ;;  %v232_v45 = vsub.f32 %v1553_v12, %v2285_v50 }
  0x18   :  { %340 = vmatpush.msra.mxu3 %v1492_v48  ;;  %125 = vmatpush.msra.mxu0 %v1483_v44  ;;  %v1641_v51 = vsub.f32 %v91_v40, %v1608_v63  ;;  %v1643_v3 = vand.u32 4294901760, %v89_v32  ;;  %v227_v50 = vand.u32 4294901760, %v226_v34  ;;  %v1657_v42 = vsub.f32 %v90_v57, %v1627_v5 }
  0x19   :  { %198 = vmatpush.msra.mxu1 %v197_v31  ;;  %291 = vmatpush.msra.mxu2 %v1510_v55  ;;  %v1617_v31 = vsub.f32 %v92_v29, %v1587_v47  ;;  %v2292_v29 = vand.u32 4294901760, %v1593_v53  ;;  %v2294_v43 = vand.u32 4294901760, %v1613_v2  ;;  %v238_v40 = vsub.f32 %v1571_v37, %v2289_v7 }
  0x1a   :  { %342 = vmatpush.msra.mxu3 %v1494_v49  ;;  %127 = vmatpush.msra.mxu0 %v1492_v48  ;;  %v233_v34 = vand.u32 4294901760, %v232_v45  ;;  %v549_v57 = vand.u32 4294901760, %v1641_v51  ;;  %v1672_v7 = vsub.f32 %v89_v32, %v1643_v3  ;;  %v555_v32 = vand.u32 4294901760, %v1657_v42 }
  0x1b   :  { %204 = vmatpush.msra.mxu1 %v203_v35  ;;  %294 = vmatpush.msra.mxu2 %v1527_v62  ;;  %v88_v35 = vld [vmem:[%s2275_s1 + $0xc8] sm:$0xff]  ;;  %v2293_v60 = vand.u32 4294901760, %v1617_v31  ;;  %v2297_v19 = vand.u32 4294901760, %v1430_v21  ;;  %v2298_v20 = vand.u32 4294901760, %v1437_v23  ;;  %v2299_v21 = vand.u32 4294901760, %v1445_v28 }
  0x1c   :  { %344 = vmatpush.msra.mxu3 %v1512_v56  ;;  %129 = vmatpush.msra.mxu0 %v1494_v49  ;;  %v1659_v33 = vand.u32 4294901760, %v88_v35  ;;  %v2303_v23 = vand.u32 4294901760, %v1503_v52  ;;  %v2309_v28 = vand.u32 4294901760, %v1593_v53  ;;  %vm101_vm15 = vcmask 392192  }
  0x1d   :  { %210 = vmatpush.msra.mxu1 %v209_v59  ;;  %297 = vmatpush.msra.mxu2 %v1542_v6  ;;  %v532_v59 = vsub.f32 %v1596_v54, %v2288_v11  ;;  %v244_v11 = vsub.f32 %v1593_v53, %v2292_v29  ;;  %v544_v45 = vsub.f32 %v1617_v31, %v2293_v60 }
  0x1e   :  { %346 = vmatpush.msra.mxu3 %v1519_v58  ;;  %131 = vmatpush.msra.mxu0 %v1512_v56  ;;  %v1685_v29 = vsub.f32 %v88_v35, %v1659_v33 }
  0x1f   :  { %216 = vmatpush.msra.mxu1 %v215_v18  ;;  %300 = vmatpush.msra.mxu2 %v1553_v12  ;;  %v538_v18 = vsub.f32 %v1606_v0, %v2291_v61  ;;  %v533_v27 = vand.u32 4294901760, %v532_v59  ;;  %v250_v61 = vsub.f32 %v1613_v2, %v2294_v43  ;;  %v245_v60 = vand.u32 4294901760, %v244_v11 }
  0x20   :  { %348 = vmatpush.msra.mxu3 %v1537_v1  ;;  %133 = vmatpush.msra.mxu0 %v1519_v58  ;;  %v545_v35 = vand.u32 4294901760, %v544_v45  ;;  %v556_v11 = vsub.f32 %v1657_v42, %v555_v32  ;;  %v82_v45 = vld [vmem:[%s2275_s1 + $0x98] sm:$0xff] }
  0x21   :  { %222 = vmatpush.msra.mxu1 %v221_v41  ;;  %303 = vmatpush.msra.mxu2 %v1571_v37  ;;  %v239_v41 = vand.u32 4294901760, %v238_v40  ;;  %v539_v59 = vand.u32 4294901760, %v538_v18  ;;  %v561_v40 = vand.u32 4294901760, %v1672_v7  ;;  %v251_v43 = vand.u32 4294901760, %v250_v61 }
  0x22   :  { %350 = vmatpush.msra.mxu3 %v1555_v13  ;;  %135 = vmatpush.msra.mxu0 %v1537_v1  ;;  %v567_v18 = vand.u32 4294901760, %v1685_v29  ;;  %v557_v61 = vand.u32 4294901760, %v556_v11 }
  0x23   :  { %228 = vmatpush.msra.mxu1 %v227_v50  ;;  %306 = vmatpush.msra.mxu2 %v1593_v53  ;;  %v550_v50 = vsub.f32 %v1641_v51, %v549_v57 }
  0x24   :  { %352 = vmatpush.msra.mxu3 %v1573_v38  ;;  %137 = vmatpush.msra.mxu0 %v1555_v13 }
  0x25   :  { %234 = vmatpush.msra.mxu1 %v233_v34  ;;  %309 = vmatpush.msra.mxu2 %v1613_v2  ;;  %v551_v34 = vand.u32 4294901760, %v550_v50  ;;  %v1818_v50 = vand.u32 4294901760, %v82_v45 }
  0x26   :  { %534 = vmatpush.msrb.mxu3 %v533_v27  ;;  %139 = vmatpush.msra.mxu0 %v1573_v38  ;;  %v562_v27 = vsub.f32 %v1672_v7, %v561_v40 }
  0x27   :  { %481 = vmatpush.msrb.mxu2 %v1575_v39  ;;  %240 = vmatpush.msra.mxu1 %v239_v41 }
  0x28   :  { %540 = vmatpush.msrb.mxu3 %v539_v59  ;;  %369 = vmatpush.msrb.mxu0 %v159_v22  ;;  %v563_v14 = vand.u32 4294901760, %v562_v27  ;;  %v87_v22 = vld [vmem:[%s2275_s1 + $0xc0] sm:$0xff] }
  0x29   :  { %483 = vmatpush.msrb.mxu2 %v1585_v46  ;;  %246 = vmatpush.msra.mxu1 %v245_v60  ;;  %v568_v60 = vsub.f32 %v1685_v29, %v567_v18 }
  0x2a   :  { %546 = vmatpush.msrb.mxu3 %v545_v35  ;;  %373 = vmatpush.msrb.mxu0 %v165_v25  ;;  %v2301_v25 = vmov 0  }
  0x2b   :  { %485 = vmatpush.msrb.mxu2 %v1587_v47  ;;  %252 = vmatpush.msra.mxu1 %v251_v43 }
  0x2c   :  { %552 = vmatpush.msrb.mxu3 %v551_v34  ;;  %377 = vmatpush.msrb.mxu0 %v171_v26  ;;  %v2305_v26 = vand.u32 4294901760, %v1527_v62 }
  0x2d   :  { %440 = vmatpush.msrb.mxu1 %v1383_v4  ;;  %487 = vmatpush.msrb.mxu2 %v1608_v63  ;;  %v569_v4 = vand.u32 4294901760, %v568_v60 }
  0x2e   :  { %558 = vmatpush.msrb.mxu3 %v557_v61  ;;  %381 = vmatpush.msrb.mxu0 %v2297_v19 }
  0x2f   :  { %442 = vmatpush.msrb.mxu1 %v1394_v8  ;;  %489 = vmatpush.msrb.mxu2 %v1627_v5  ;;  %v1729_v8 = vand.u32 4294901760, %v87_v22 }
  0x30   :  { %564 = vmatpush.msrb.mxu3 %v563_v14  ;;  %385 = vmatpush.msrb.mxu0 %v2298_v20  ;;  %v1838_v20 = vsub.f32 %v82_v45, %v1818_v50 }
  0x31   :  { %444 = vmatpush.msrb.mxu1 %v1396_v9  ;;  %491 = vmatpush.msrb.mxu2 %v1643_v3  ;;  %v2300_v9 = vand.u32 4294901760, %v1454_v30  ;;  %v2310_v30 = vand.u32 4294901760, %v1613_v2 }
  0x32   :  { %570 = vmatpush.msrb.mxu3 %v569_v4  ;;  %389 = vmatpush.msrb.mxu0 %v2299_v21  ;;  %v80_v21 = vld [vmem:[%s2275_s1 + $0x88] sm:$0xff] }
  0x33   :  { %446 = vmatpush.msrb.mxu1 %v1398_v10  ;;  %493 = vmatpush.msrb.mxu2 %v1659_v33  ;;  %v2302_v10 = vand.u32 4294901760, %v1470_v36  ;;  %v86_v36 = vld [vmem:[%s2275_s1 + $0xb8] sm:$0xff] }
  0x34   :  { %393 = vmatpush.msrb.mxu0 %v2300_v9  ;;  %1317 = vset.pattern.permute.xlu0 %v2301_v25  ;;  %v1770_v43 = vand.u32 4294901760, %v86_v36  ;;  %v603_v9 = vand.u32 4294901760, %v1838_v20  ;;  %v1845_v25 = vand.u32 4294901760, %v80_v21 }
  0x35   :  { %448 = vmatpush.msrb.mxu1 %v1413_v15  ;;  %495 = vmatpush.msrb.mxu2 %v1729_v8  ;;  %v2304_v15 = vand.u32 4294901760, %v1510_v55 }
  0x36   :  { %397 = vmatpush.msrb.mxu0 %v2302_v10  ;;  %v1783_v55 = vsub.f32 %v86_v36, %v1770_v43 }
  0x37   :  { %450 = vmatpush.msrb.mxu1 %v1416_v16  ;;  %v2306_v16 = vand.u32 4294901760, %v1542_v6  ;;  %497 = vmatpush.msrb.mxu2 %v1770_v43 }
  0x38   :  { %401 = vmatpush.msrb.mxu0 %v2303_v23  ;;  %v579_v62 = vand.u32 4294901760, %v1783_v55  ;;  %v79_v23 = vld [vmem:[%s2275_s1 + $0x80] sm:$0xff] }
  0x39   :  { %452 = vmatpush.msrb.mxu1 %v1418_v17  ;;  %v2307_v17 = vand.u32 4294901760, %v1553_v12  ;;  %v83_v12 = vld [vmem:[%s2275_s1 + $0xa0] sm:$0xff] }
  0x3a   :  { %405 = vmatpush.msrb.mxu0 %v2304_v15  ;;  %v1806_v53 = vand.u32 4294901760, %v83_v12  ;;  %v604_v15 = vsub.f32 %v1838_v20, %v603_v9 }
  0x3b   :  { %454 = vmatpush.msrb.mxu1 %v1439_v24  ;;  %v2308_v24 = vand.u32 4294901760, %v1571_v37  ;;  %v580_v37 = vsub.f32 %v1783_v55, %v579_v62 }
  0x3c   :  { %409 = vmatpush.msrb.mxu0 %v2305_v26  ;;  %v1821_v35 = vsub.f32 %v83_v12, %v1806_v53 }
  0x3d   :  { %456 = vmatpush.msrb.mxu1 %v1483_v44  ;;  %v1773_v44 = vsub.f32 %v87_v22, %v1729_v8  ;;  %v581_v41 = vand.u32 4294901760, %v580_v37  ;;  %v81_v22 = vld [vmem:[%s2275_s1 + $0x90] sm:$0xff] }
  0x3e   :  { %413 = vmatpush.msrb.mxu0 %v2306_v16  ;;  %v597_v27 = vand.u32 4294901760, %v1821_v35  ;;  %v1835_v4 = vand.u32 4294901760, %v81_v22  ;;  %v1858_v16 = vand.u32 4294901760, %v79_v23 }
  0x3f   :  { %458 = vmatpush.msrb.mxu1 %v1492_v48  ;;  %v85_v48 = vld [vmem:[%s2275_s1 + $0xb0] sm:$0xff] }
  0x40   :  { %417 = vmatpush.msrb.mxu0 %v2307_v17  ;;  %v1780_v52 = vand.u32 4294901760, %v85_v48  ;;  %v598_v60 = vsub.f32 %v1821_v35, %v597_v27  ;;  %v1848_v10 = vsub.f32 %v81_v22, %v1835_v4  ;;  %v1861_v17 = vsub.f32 %v80_v21, %v1845_v25 }
  0x41   :  { %460 = vmatpush.msrb.mxu1 %v1494_v49  ;;  %v573_v49 = vand.u32 4294901760, %v1773_v44  ;;  %v1869_v36 = vsub.f32 %v79_v23, %v1858_v16  ;;  %v1349_v21 = vmov 1.0   ;;  %v1350_v23 = vmov 0.0  }
  0x42   :  { %421 = vmatpush.msrb.mxu0 %v2308_v24  ;;  %499 = vmatpush.msrb.mxu2 %v1780_v52  ;;  %v1796_v6 = vsub.f32 %v85_v48, %v1780_v52  ;;  %v599_v19 = vand.u32 4294901760, %v598_v60  ;;  %v609_v26 = vand.u32 4294901760, %v1848_v10  ;;  %v605_v24 = vand.u32 4294901760, %v604_v15 }
  0x43   :  { %462 = vmatpush.msrb.mxu1 %v1512_v56  ;;  %v84_v56 = vld [vmem:[%s2275_s1 + $0xa8] sm:$0xff]  ;;  %v2323_v22 = vand.u32 4294901760, %v1869_v36 }
  0x44   :  { %425 = vmatpush.msrb.mxu0 %v2309_v28  ;;  %v610_v28 = vsub.f32 %v1848_v10, %v609_v26 }
  0x45   :  { %464 = vmatpush.msrb.mxu1 %v1519_v58  ;;  %v574_v58 = vsub.f32 %v1773_v44, %v573_v49 }
  0x46   :  { %429 = vmatpush.msrb.mxu0 %v2310_v30  ;;  %v2296_v30 = vand.u32 4294901760, %v1861_v17  ;;  %v611_v48 = vand.u32 4294901760, %v610_v28 }
  0x47   :  { %466 = vmatpush.msrb.mxu1 %v1537_v1  ;;  %v1793_v1 = vand.u32 4294901760, %v84_v56 }
  0x49   :  { %468 = vmatpush.msrb.mxu1 %v1555_v13  ;;  %v575_v13 = vand.u32 4294901760, %v574_v58  ;;  %501 = vmatpush.msrb.mxu2 %v1793_v1  ;;  %v1809_v2 = vsub.f32 %v84_v56, %v1793_v1  ;;  %v616_v56 = vsub.f32 %v1861_v17, %v2296_v30  ;;  %v2295_v58 = vand.u32 4294901760, %v1869_v36 }
  0x4b   :  { %470 = vmatpush.msrb.mxu1 %v1573_v38  ;;  %v585_v38 = vand.u32 4294901760, %v1796_v6  ;;  %576 = vmatpush.msrb.mxu3 %v575_v13  ;;  %v591_v11 = vand.u32 4294901760, %v1809_v2  ;;  %v617_v12 = vand.u32 4294901760, %v616_v56  ;;  %v622_v13 = vsub.f32 %v1869_v36, %v2295_v58 }
  0x4c   :  { %503 = vmatpush.msrb.mxu2 %v1806_v53 }
  0x4d   :  { %v586_v59 = vsub.f32 %v1796_v6, %v585_v38  ;;  %582 = vmatpush.msrb.mxu3 %v581_v41  ;;  %v592_v61 = vsub.f32 %v1809_v2, %v591_v11  ;;  %v623_v37 = vand.u32 4294901760, %v622_v13 }
  0x4e   :  { %505 = vmatpush.msrb.mxu2 %v1818_v50 }
  0x4f   :  { %v587_v34 = vand.u32 4294901760, %v586_v59  ;;  %v593_v14 = vand.u32 4294901760, %v592_v61  ;;  %v17_v59 = vlaneseq }
  0x50   :  { %507 = vmatpush.msrb.mxu2 %v1835_v4 }
  0x51   :  { %588 = vmatpush.msrb.mxu3 %v587_v34  ;;  %v1882_v34 = vand.u32 127, %v17_v59 }
  0x52   :  { %509 = vmatpush.msrb.mxu2 %v1845_v25 }
  0x53   :  { %594 = vmatpush.msrb.mxu3 %v593_v14  ;;  %v19_v14 = vadd.s32 128, %v1882_v34 }
  0x54   :  { %511 = vmatpush.msrb.mxu2 %v1858_v16 }
  0x55   :  { %600 = vmatpush.msrb.mxu3 %v599_v19 }
  0x57   :  { %606 = vmatpush.msrb.mxu3 %v605_v24 }
  0x59   :  { %612 = vmatpush.msrb.mxu3 %v611_v48 }
  0x5b   :  { %618 = vmatpush.msrb.mxu3 %v617_v12  ;;  %v2317_v12 = vand.u32 4294901760, %v1596_v54 }
  0x5d   :  { %624 = vmatpush.msrb.mxu3 %v623_v37 }
  0x74   :  { %v1878_v45 = vpop.permute.xlu0 %22  ;;  %v1880_v41 = vpop.permute.xlu1 %25 }
  0x75   :  { %vm30_vm0 = vcmp.eq.s32.totalorder %v1882_v34, %v1880_v41  ;;  %vm27_vm3 = vcmp.eq.s32.totalorder %v1882_v34, %v1878_v45  ;;  %vm28_vm7 = vcmp.eq.s32.totalorder %v19_v14, %v1878_v45  ;;  %vm31_vm9 = vcmp.eq.s32.totalorder %v19_v14, %v1880_v41 }
  0x7e   :  { %v1884_v61 = vpop.permute.xlu1 %37  ;;  %v1886_v60 = vpop.permute.xlu0 %34 }
  0x7f   :  { %vm42_vm1 = vcmp.eq.s32.totalorder %v1882_v34, %v1884_v61  ;;  %vm39_vm2 = vcmp.eq.s32.totalorder %v1882_v34, %v1886_v60  ;;  %vm40_vm5 = vcmp.eq.s32.totalorder %v19_v14, %v1886_v60  ;;  %vm43_vm10 = vcmp.eq.s32.totalorder %v19_v14, %v1884_v61 }
  0x80   :  { %vm1897_vm4 = vmor %vm30_vm0, %vm42_vm1 }
  0x81   :  { %vm1902_vm6 = vmor %vm27_vm3, %vm39_vm2  ;;  %v1273_v48 = vsel %vm1897_vm4, 1.0, %v1350_v23  ;;  %vm1120_vm3 = vcmask 523264  }
  0x82   :  { %1276 = vmatmul.msk.f32.vlgmr.msra.gmra.mxu1 %vm1902_vm6, %v1349_v21  ;;  %v1270_v15 = vsel %vm1902_vm6, 1.0, %v1350_v23  ;;  %vm1914_vm8 = vmor %vm28_vm7, %vm40_vm5  ;;  %v149_v59 = vsub.f32 %v1273_v48, %v1273_v48  ;;  %vm1222_vm5 = vcmask 130048  }
  0x83   :  { %694 = vmatpush.msra.mxu1 %v1575_v39  ;;  %v141_v24 = vsub.f32 %v1270_v15, %v1270_v15  ;;  %v1271_v13 = vsel %vm1914_vm8, 1.0, %v1350_v23  ;;  %v2318_v15 = vand.u32 4294901760, %v1606_v0  ;;  %vm1947_vm11 = vmor %vm31_vm9, %vm43_vm10 }
  0x84   :  { %v1932_v30 = vsub.f32 %v1271_v13, %v1271_v13 }
  0x85   :  { %312 = vmatmul.f32.vlgmr.msra.gmra.mxu2 %v141_v24  ;;  %696 = vmatpush.msra.mxu1 %v1585_v46  ;;  %v142_v56 = vand.u32 4294901760, %v141_v24 }
  0x86   :  { %741 = vmatpush.msra.mxu2 %v2317_v12  ;;  %v2319_v12 = vand.u32 4294901760, %v1617_v31 }
  0x87   :  { %356 = vmatmul.f32.vlgmr.msra.gmra.mxu3 %v142_v56  ;;  %698 = vmatpush.msra.mxu1 %v1587_v47  ;;  %v143_v37 = vsub.f32 %v141_v24, %v142_v56 }
  0x88   :  { %745 = vmatpush.msra.mxu2 %v2318_v15  ;;  %812 = vmatpush.msra.mxu3 %v1575_v39  ;;  %v150_v39 = vand.u32 4294901760, %v149_v59 }
  0x89   :  { %700 = vmatpush.msra.mxu1 %v1608_v63  ;;  %v144_v58 = vand.u32 4294901760, %v143_v37 }
  0x8a   :  { %1277 = vmatmul.msk.f32.gmra.mxu1 %vm1897_vm4, %v1349_v21  ;;  %749 = vmatpush.msra.mxu2 %v2319_v12 }
  0x8b   :  { %814 = vmatpush.msra.mxu3 %v1585_v46  ;;  %145 = vmatmul.f32.vlgmr.msra.gmra.mxu0 %v144_v58  ;;  %v514_v46 = vand.u32 4294901760, %v1932_v30 }
  0x8c   :  { %702 = vmatpush.msra.mxu1 %v1627_v5  ;;  %636 = vmatpush.msra.mxu0 %v1596_v54  ;;  %v151_v54 = vsub.f32 %v149_v59, %v150_v39 }
  0x8d   :  { %753 = vmatpush.msra.mxu2 %v549_v57  ;;  %816 = vmatpush.msra.mxu3 %v1587_v47  ;;  %v1274_v47 = vsel %vm1947_vm11, 1.0, %v1350_v23 }
  0x8e   :  { %317 = vmatmul.f32.gmra.mxu2 %v149_v59  ;;  %704 = vmatpush.msra.mxu1 %v1643_v3 }
  0x8f   :  { %639 = vmatpush.msra.mxu0 %v1606_v0  ;;  %757 = vmatpush.msra.mxu2 %v555_v32  ;;  %v515_v0 = vsub.f32 %v1932_v30, %v514_v46  ;;  %v99_v32 = vld [vmem:[%s2275_s1 + $0x120] sm:$0xff] }
  0x90   :  { %818 = vmatpush.msra.mxu3 %v1608_v63  ;;  %706 = vmatpush.msra.mxu1 %v1659_v33  ;;  %v152_v63 = vand.u32 4294901760, %v151_v54 }
  0x91   :  { %362 = vmatmul.f32.gmra.mxu3 %v150_v39  ;;  %642 = vmatpush.msra.mxu0 %v1617_v31  ;;  %v1975_v31 = vsub.f32 %v1274_v47, %v1274_v47 }
  0x92   :  { %761 = vmatpush.msra.mxu2 %v561_v40  ;;  %820 = vmatpush.msra.mxu3 %v1627_v5  ;;  %v100_v5 = vld [vmem:[%s2275_s1 + $0x128] sm:$0xff] }
  0x93   :  { %708 = vmatpush.msra.mxu1 %v1729_v8  ;;  %645 = vmatpush.msra.mxu0 %v1641_v51  ;;  %v516_v51 = vand.u32 4294901760, %v515_v0  ;;  %v1988_v57 = vand.u32 4294901760, %v100_v5 }
  0x94   :  { %1280 = vmatmul.msk.f32.vlgmr.msrb.gmra.mxu1 %vm1902_vm6, %v1349_v21  ;;  %765 = vmatpush.msra.mxu2 %v567_v18  ;;  %v97_v18 = vld [vmem:[%s2275_s1 + $0x110] sm:$0xff] }
  0x95   :  { %822 = vmatpush.msra.mxu3 %v1643_v3  ;;  %153 = vmatmul.f32.gmra.mxu0 %v152_v63  ;;  %v522_v3 = vand.u32 4294901760, %v1975_v31  ;;  %v2014_v40 = vsub.f32 %v100_v5, %v1988_v57 }
  0x96   :  { %710 = vmatpush.msra.mxu1 %v1770_v43  ;;  %648 = vmatpush.msra.mxu0 %v1657_v42  ;;  %v2005_v42 = vand.u32 4294901760, %v99_v32 }
  0x97   :  { %769 = vmatpush.msra.mxu2 %v573_v49  ;;  %824 = vmatpush.msra.mxu3 %v1659_v33  ;;  %v98_v33 = vld [vmem:[%s2275_s1 + $0x118] sm:$0xff] }
  0x98   :  { %517 = vmatmul.f32.vlgmr.msrb.gmra.mxu2 %v516_v51  ;;  %712 = vmatpush.msra.mxu1 %v1780_v52 }
  0x99   :  { %651 = vmatpush.msra.mxu0 %v1672_v7  ;;  %773 = vmatpush.msra.mxu2 %v579_v62  ;;  %v523_v7 = vsub.f32 %v1975_v31, %v522_v3  ;;  %v903_v62 = vand.u32 4294901760, %v2014_v40 }
  0x9a   :  { %826 = vmatpush.msra.mxu3 %v1729_v8  ;;  %714 = vmatpush.msra.mxu1 %v1793_v1  ;;  %v96_v8 = vld [vmem:[%s2275_s1 + $0x108] sm:$0xff] }
  0x9b   :  { %1282 = vmatmul.msk.f32.vlgmr.msrb.gmra.mxu3 %vm1914_vm8, %v1349_v21  ;;  %654 = vmatpush.msra.mxu0 %v1685_v29  ;;  %v2021_v29 = vand.u32 4294901760, %v98_v33  ;;  %v524_v49 = vand.u32 4294901760, %v523_v7 }
  0x9c   :  { %777 = vmatpush.msra.mxu2 %v585_v38  ;;  %828 = vmatpush.msra.mxu3 %v1770_v43  ;;  %v2036_v43 = vsub.f32 %v99_v32, %v2005_v42 }
  0x9d   :  { %716 = vmatpush.msra.mxu1 %v1806_v53  ;;  %657 = vmatpush.msra.mxu0 %v1773_v44  ;;  %v2038_v44 = vand.u32 4294901760, %v97_v18  ;;  %v2050_v38 = vsub.f32 %v98_v33, %v2021_v29 }
  0x9e   :  { %1281 = vmatmul.msk.f32.gmra.mxu1 %vm1897_vm4, %v1349_v21  ;;  %781 = vmatpush.msra.mxu2 %v591_v11  ;;  %v2052_v11 = vand.u32 4294901760, %v96_v8 }
  0x9f   :  { %830 = vmatpush.msra.mxu3 %v1780_v52  ;;  %1278 = vmatmul.msk.f32.vlgmr.msrb.gmra.mxu0 %vm1902_vm6, %v1349_v21  ;;  %v95_v52 = vld [vmem:[%s2275_s1 + $0x100] sm:$0xff]  ;;  %v2060_v58 = vsub.f32 %v97_v18, %v2038_v44  ;;  %vm1252_vm6 = vcmask 122880  }
  0xa0   :  { %718 = vmatpush.msra.mxu1 %v1818_v50  ;;  %660 = vmatpush.msra.mxu0 %v1783_v55  ;;  %v909_v55 = vand.u32 4294901760, %v2036_v43  ;;  %v2076_v14 = vsub.f32 %v96_v8, %v2052_v11 }
  0xa1   :  { %785 = vmatpush.msra.mxu2 %v597_v27  ;;  %832 = vmatpush.msra.mxu3 %v1793_v1  ;;  %v2062_v27 = vand.u32 4294901760, %v95_v52  ;;  %v904_v1 = vsub.f32 %v2014_v40, %v903_v62 }
  0xa2   :  { %525 = vmatmul.f32.gmra.mxu2 %v524_v49  ;;  %720 = vmatpush.msra.mxu1 %v1835_v4 }
  0xa3   :  { %663 = vmatpush.msra.mxu0 %v1796_v6  ;;  %789 = vmatpush.msra.mxu2 %v603_v9  ;;  %v20_v6 = vadd.s32 256, %v1882_v34  ;;  %v915_v9 = vand.u32 4294901760, %v2050_v38  ;;  %v2089_v34 = vsub.f32 %v95_v52, %v2062_v27 }
  0xa4   :  { %834 = vmatpush.msra.mxu3 %v1806_v53  ;;  %722 = vmatpush.msra.mxu1 %v1845_v25  ;;  %v910_v53 = vsub.f32 %v2036_v43, %v909_v55 }
  0xa5   :  { %1283 = vmatmul.msk.f32.gmra.mxu3 %vm1947_vm11, %v1349_v21  ;;  %666 = vmatpush.msra.mxu0 %v1809_v2  ;;  %vm41_vm12 = vcmp.eq.s32.totalorder %v20_v6, %v1886_v60  ;;  %v921_v2 = vand.u32 4294901760, %v2060_v58  ;;  %vm29_vm13 = vcmp.eq.s32.totalorder %v20_v6, %v1878_v45  ;;  %v927_v60 = vand.u32 4294901760, %v2076_v14 }
  0xa6   :  { %793 = vmatpush.msra.mxu2 %v609_v26  ;;  %836 = vmatpush.msra.mxu3 %v1818_v50  ;;  %v2322_v50 = vand.u32 4294901760, %v1861_v17  ;;  %v905_v26 = vand.u32 4294901760, %v904_v1  ;;  %vm47_vm14 = vmor %vm29_vm13, %vm41_vm12  ;;  %v933_v19 = vand.u32 4294901760, %v2089_v34  ;;  %vm32_vm0 = vcmp.eq.s32.totalorder %v20_v6, %v1880_v41 }
  0xa7   :  { %724 = vmatpush.msra.mxu1 %v1858_v16  ;;  %669 = vmatpush.msra.mxu0 %v1821_v35  ;;  %v916_v35 = vsub.f32 %v2050_v38, %v915_v9  ;;  %v922_v45 = vsub.f32 %v2060_v58, %v921_v2  ;;  %v928_v48 = vsub.f32 %v2076_v14, %v927_v60 }
  0xa8   :  { %728 = vmatmul.f32.vlgmr.msra.gmra.mxu1 %v514_v46  ;;  %797 = vmatpush.msra.mxu2 %v2322_v50  ;;  %vm44_vm1 = vcmp.eq.s32.totalorder %v20_v6, %v1884_v61  ;;  %v1094_v50 = vld [vmem:[%s2276_s2] sm:$0xff] }
  0xa9   :  { %838 = vmatpush.msra.mxu3 %v1835_v4  ;;  %1279 = vmatmul.msk.f32.gmra.mxu0 %vm1897_vm4, %v1349_v21  ;;  %v911_v4 = vand.u32 4294901760, %v910_v53  ;;  %v929_v41 = vand.u32 4294901760, %v928_v48  ;;  %vm50_vm2 = vmor %vm32_vm0, %vm44_vm1  ;;  %v1095_v53 = vld [vmem:[%s2276_s2 + $0x8] sm:$0xff]  ;;  %vm1185_vm4 = vcmask 261120  }
  0xaa   :  { %672 = vmatpush.msra.mxu0 %v1838_v20  ;;  %801 = vmatpush.msra.mxu2 %v2323_v22  ;;  %v2117_v20 = vsel %vm47_vm14, 1.0, %v1350_v23 }
  0xab   :  { %840 = vmatpush.msra.mxu3 %v1845_v25  ;;  %1284 = vmatmul.msk.f32.vlgmr.msra.gmra.mxu2 %vm1914_vm8, %v1349_v21  ;;  %v917_v25 = vand.u32 4294901760, %v916_v35 }
  0xac   :  { %675 = vmatpush.msra.mxu0 %v1848_v10  ;;  %906 = vmatpush.msrb.mxu1 %v905_v26  ;;  %v923_v10 = vand.u32 4294901760, %v922_v45 }
  0xad   :  { %842 = vmatpush.msra.mxu3 %v1858_v16  ;;  %958 = vmatpush.msrb.mxu2 %v2014_v40  ;;  %v934_v16 = vsub.f32 %v2089_v34, %v933_v19  ;;  %v1101_v40 = vld [vmem:[%s2276_s2 + $0x38] sm:$0xff] }
  0xae   :  { %1286 = vmatmul.msk.f32.vlgmr.msra.gmra.mxu3 %vm1914_vm8, %v1349_v21  ;;  %678 = vmatpush.msra.mxu0 %v1861_v17  ;;  %v103_v17 = vsel %vm101_vm15, %v2117_v20, 0 }
  0xaf   :  { %912 = vmatpush.msrb.mxu1 %v911_v4  ;;  %961 = vmatpush.msrb.mxu2 %v2036_v43  ;;  %v875_v61 = vsub.f32 %v103_v17, %v103_v17  ;;  %v1100_v43 = vld [vmem:[%s2276_s2 + $0x30] sm:$0xff] }
  0xb0   :  { %681 = vmatpush.msra.mxu0 %v1869_v36  ;;  %734 = vmatmul.f32.gmra.mxu1 %v522_v3  ;;  %v935_v36 = vand.u32 4294901760, %v934_v16  ;;  %v1108_v16 = vld [vmem:[%s2276_s2 + $0x70] sm:$0xff] }
  0xb1   :  { %684 = vmatmul.f32.vlgmr.msra.gmra.mxu0 %v1932_v30  ;;  %918 = vmatpush.msrb.mxu1 %v917_v25  ;;  %v1275_v30 = vsel %vm50_vm2, 1.0, %v1350_v23  ;;  %v876_v28 = vand.u32 4294901760, %v875_v61 }
  0xb2   :  { %996 = vmatpush.msrb.mxu3 %v1988_v57  ;;  %964 = vmatpush.msrb.mxu2 %v2050_v38  ;;  %v106_v56 = vsel %vm101_vm15, %v1275_v30, 0  ;;  %v1098_v38 = vld [vmem:[%s2276_s2 + $0x20] sm:$0xff] }
  0xb3   :  { %1285 = vmatmul.msk.f32.gmra.mxu2 %vm1947_vm11, %v1349_v21  ;;  %924 = vmatpush.msrb.mxu1 %v923_v10  ;;  %v883_v23 = vsub.f32 %v106_v56, %v106_v56  ;;  %v1109_v10 = vld [vmem:[%s2276_s2 + $0x78] sm:$0xff] }
  0xb4   :  { %998 = vmatpush.msrb.mxu3 %v2005_v42  ;;  %863 = vmatpush.msrb.mxu0 %v1988_v57 }
  0xb5   :  { %930 = vmatpush.msrb.mxu1 %v929_v41  ;;  %967 = vmatpush.msrb.mxu2 %v2060_v58  ;;  %v884_v37 = vand.u32 4294901760, %v883_v23  ;;  %v1097_v58 = vld [vmem:[%s2276_s2 + $0x18] sm:$0xff]  ;;  %v1107_v41 = vld [vmem:[%s2276_s2 + $0x68] sm:$0xff] }
  0xb6   :  { %1287 = vmatmul.msk.f32.gmra.mxu3 %vm1947_vm11, %v1349_v21  ;;  %865 = vmatpush.msrb.mxu0 %v2005_v42  ;;  %v877_v21 = vsub.f32 %v875_v61, %v876_v28 }
  0xb7   :  { %1000 = vmatpush.msrb.mxu3 %v2021_v29  ;;  %936 = vmatpush.msrb.mxu1 %v935_v36  ;;  %v885_v59 = vsub.f32 %v883_v23, %v884_v37 }
  0xb8   :  { %1288 = vmatmul.msk.f32.vlgmr.msrb.gmra.mxu1 %vm101_vm15, %v2117_v20  ;;  %970 = vmatpush.msrb.mxu2 %v2076_v14  ;;  %v878_v13 = vand.u32 4294901760, %v877_v21 }
  0xb9   :  { %1002 = vmatpush.msrb.mxu3 %v2038_v44  ;;  %689 = vmatmul.f32.gmra.mxu0 %v1975_v31  ;;  %v886_v15 = vand.u32 4294901760, %v885_v59 }
  0xba   :  { %867 = vmatpush.msrb.mxu0 %v2021_v29  ;;  %973 = vmatpush.msrb.mxu2 %v2089_v34 }
  0xbb   :  { %1004 = vmatpush.msrb.mxu3 %v2052_v11  ;;  %976 = vmatmul.f32.vlgmr.msrb.gmra.mxu2 %v875_v61 }
  0xbc   :  { %869 = vmatpush.msrb.mxu0 %v2038_v44  ;;  %1074 = vmatpush.msra.mxu1 %v1988_v57 }
  0xbd   :  { %1006 = vmatpush.msrb.mxu3 %v2062_v27  ;;  %1135 = vmatpush.msra.mxu2 %v1101_v40 }
  0xbe   :  { %1010 = vmatmul.f32.vlgmr.msrb.gmra.mxu3 %v876_v28  ;;  %871 = vmatpush.msrb.mxu0 %v2052_v11  ;;  %v1106_v28 = vld [vmem:[%s2276_s2 + $0x60] sm:$0xff] }
  0xbf   :  { %1076 = vmatpush.msra.mxu1 %v2005_v42  ;;  %1136 = vmatpush.msra.mxu2 %v1100_v43  ;;  %v1102_v43 = vld [vmem:[%s2276_s2 + $0x40] sm:$0xff] }
  0xc0   :  { %873 = vmatpush.msrb.mxu0 %v2062_v27  ;;  %1289 = vmatmul.msk.f32.gmra.mxu1 %vm101_vm15, %v1275_v30 }
  0xc1   :  { %879 = vmatmul.f32.vlgmr.msrb.gmra.mxu0 %v878_v13  ;;  %1078 = vmatpush.msra.mxu1 %v2021_v29 }
  0xc2   :  { %1033 = vmatpush.msra.mxu0 %v903_v62  ;;  %v1099_v62 = vld [vmem:[%s2276_s2 + $0x28] sm:$0xff]  ;;  %1167 = vmatpush.msra.mxu3 %v1109_v10 }
  0xc3   :  { %981 = vmatmul.f32.gmra.mxu2 %v883_v23  ;;  %1080 = vmatpush.msra.mxu1 %v2038_v44  ;;  %v1105_v23 = vld [vmem:[%s2276_s2 + $0x58] sm:$0xff] }
  0xc4   :  { %1037 = vmatpush.msra.mxu0 %v909_v55  ;;  %1137 = vmatpush.msra.mxu2 %v1099_v62 }
  0xc5   :  { %1082 = vmatpush.msra.mxu1 %v2052_v11  ;;  %1168 = vmatpush.msra.mxu3 %v1108_v16 }
  0xc6   :  { %1016 = vmatmul.f32.gmra.mxu3 %v884_v37  ;;  %1041 = vmatpush.msra.mxu0 %v915_v9  ;;  %v1096_v9 = vld [vmem:[%s2276_s2 + $0x10] sm:$0xff] }
  0xc7   :  { %1084 = vmatpush.msra.mxu1 %v2062_v27  ;;  %1138 = vmatpush.msra.mxu2 %v1098_v38 }
  0xc8   :  { %1292 = vmatmul.msk.f32.vlgmr.msra.gmra.mxu1 %vm101_vm15, %v2117_v20  ;;  %1045 = vmatpush.msra.mxu0 %v921_v2 }
  0xc9   :  { %887 = vmatmul.f32.gmra.mxu0 %v886_v15  ;;  %1139 = vmatpush.msra.mxu2 %v1097_v58 }
  0xca   :  { %1049 = vmatpush.msra.mxu0 %v927_v60  ;;  %1169 = vmatpush.msra.mxu3 %v1107_v41 }
  0xcb   :  { %1140 = vmatpush.msra.mxu2 %v1096_v9  ;;  %v1319_v9 = vld [vmem:[%s2276_s2 + $0xa1] ss:$0 sm:$0xff] }
  0xcc   :  { %1053 = vmatpush.msra.mxu0 %v933_v19  ;;  %1170 = vmatpush.msra.mxu3 %v1106_v28 }
  0xcd   :  { %1141 = vmatpush.msra.mxu2 %v1095_v53 }
  0xce   :  { %1171 = vmatpush.msra.mxu3 %v1105_v23 }
  0xcf   :  { %1142 = vmatpush.msra.mxu2 %v1094_v50 }
  0xd0   :  { %1293 = vmatmul.msk.f32.gmra.mxu1 %vm101_vm15, %v1275_v30 }
  0xd1   :  { %1290 = vmatmul.msk.f32.vlgmr.msra.gmra.mxu0 %vm101_vm15, %v2117_v20 }
  0xd9   :  { %1291 = vmatmul.msk.f32.gmra.mxu0 %vm101_vm15, %v1275_v30 }
  0xff   :  { %v255_v12 = vpop.f32.mrf.mxu1 }
 0x107   :  { %v259_v39 = vpop.f32.mrf.mxu1 }
 0x108   :  { %v146_v24 = vpop.f32.mrf.mxu0  ;;  %v313_v46 = vpop.f32.mrf.mxu2 }
 0x109   :  { %v256_v5 = vadd.f32 %v255_v12, %v146_v24 }
 0x10a   :  { %v357_v54 = vpop.f32.mrf.mxu3 }
 0x10b   :  { %v314_v32 = vadd.f32 %v313_v46, %v256_v5 }
 0x10d   :  { %v358_v42 = vadd.f32 %v357_v54, %v314_v32 }
 0x111   :  { %v473_v47 = vpop.f32.mrf.mxu1  ;;  %v318_v63 = vpop.f32.mrf.mxu2 }
 0x112   :  { %v154_v0 = vpop.f32.mrf.mxu0 }
 0x113   :  { %v260_v7 = vadd.f32 %v259_v39, %v154_v0 }
 0x114   :  { %v363_v31 = vpop.f32.mrf.mxu3 }
 0x115   :  { %v319_v44 = vadd.f32 %v318_v63, %v260_v7 }
 0x117   :  { %v364_v11 = vadd.f32 %v363_v31, %v319_v44  ;;  %v1113_v44 = vld [vmem:[%s2276_s2 + $0x98] sm:$0xff] }
 0x118   :  { %1204 = vmatpush.msrb.mxu0 %v1113_v44  ;;  %1303 = vmatpush.msrb.mxu2 %v1113_v44 }
 0x11b   :  { %v477_v51 = vpop.f32.mrf.mxu1  ;;  %v518_v57 = vpop.f32.mrf.mxu2 }
 0x11c   :  { %v432_v3 = vpop.f32.mrf.mxu0 }
 0x11d   :  { %v433_v18 = vadd.f32 %v432_v3, %v358_v42 }
 0x11e   :  { %v627_v33 = vpop.f32.mrf.mxu3 }
 0x11f   :  { %v474_v52 = vadd.f32 %v473_v47, %v433_v18 }
 0x121   :  { %v519_v27 = vadd.f32 %v518_v57, %v474_v52 }
 0x123   :  { %v628_v2 = vadd.f32 %v627_v33, %v519_v27  ;;  %v1112_v27 = vld [vmem:[%s2276_s2 + $0x90] sm:$0xff] }
 0x124   :  { %1205 = vmatpush.msrb.mxu0 %v1112_v27  ;;  %1304 = vmatpush.msrb.mxu2 %v1112_v27 }
 0x125   :  { %v729_v29 = vpop.f32.mrf.mxu1  ;;  %v526_v49 = vpop.f32.mrf.mxu2 }
 0x126   :  { %v436_v8 = vpop.f32.mrf.mxu0 }
 0x127   :  { %v437_v1 = vadd.f32 %v436_v8, %v364_v11  ;;  %v1103_v8 = vld [vmem:[%s2276_s2 + $0x48] sm:$0xff] }
 0x128   :  { %v631_v55 = vpop.f32.mrf.mxu3 }
 0x129   :  { %v478_v34 = vadd.f32 %v477_v51, %v437_v1  ;;  %v1111_v1 = vld [vmem:[%s2276_s2 + $0x88] sm:$0xff] }
 0x12a   :  { %1206 = vmatpush.msrb.mxu0 %v1111_v1  ;;  %1305 = vmatpush.msrb.mxu2 %v1111_v1 }
 0x12b   :  { %v527_v60 = vadd.f32 %v526_v49, %v478_v34  ;;  %v1318_v49 = vld [vmem:[%s2276_s2 + $0xa0] ss:$0 sm:$0xff] }
 0x12d   :  { %v735_v14 = vpop.f32.mrf.mxu1  ;;  %v632_v19 = vadd.f32 %v631_v55, %v527_v60  ;;  %v1320_v60 = vld [vmem:[%s2276_s2 + $0xa2] ss:$0 sm:$0xff] }
 0x12e   :  { %v685_v6 = vpop.f32.mrf.mxu0  ;;  %v804_v26 = vpop.f32.mrf.mxu2 }
 0x12f   :  { %v686_v35 = vadd.f32 %v685_v6, %v628_v2  ;;  %v1110_v6 = vld [vmem:[%s2276_s2 + $0x80] sm:$0xff] }
 0x130   :  { %1207 = vmatpush.msrb.mxu0 %v1110_v6  ;;  %1306 = vmatpush.msrb.mxu2 %v1110_v6 }
 0x131   :  { %v845_v22 = vpop.f32.mrf.mxu3  ;;  %v730_v45 = vadd.f32 %v729_v29, %v686_v35  ;;  %v1104_v29 = vld [vmem:[%s2276_s2 + $0x50] sm:$0xff]  ;;  %v1118_v35 = vld [vmem:[%s2276_s2 + $0xa4] sm:$0x1] }
 0x132   :  { %1172 = vmatpush.msra.mxu3 %v1104_v29  ;;  %1219 = vperm.xlu2 %1316, %v1118_v35  }
 0x133   :  { %v805_v25 = vadd.f32 %v804_v26, %v730_v45 }
 0x134   :  { %1173 = vmatpush.msra.mxu3 %v1103_v8 }
 0x135   :  { %v939_v20 = vpop.f32.mrf.mxu1  ;;  %v846_v61 = vadd.f32 %v845_v22, %v805_v25 }
 0x136   :  { %v690_v4 = vpop.f32.mrf.mxu0  ;;  %v808_v17 = vpop.f32.mrf.mxu2  ;;  %1174 = vmatpush.msra.mxu3 %v1102_v43 }
 0x137   :  { %v691_v48 = vadd.f32 %v690_v4, %v632_v19 }
 0x139   :  { %v736_v30 = vadd.f32 %v735_v14, %v691_v48  ;;  %v849_v56 = vpop.f32.mrf.mxu3  ;;  %v1117_v48 = vld [vmem:[%s2276_s2 + $0xa3] sm:$0x1] }
 0x13b   :  { %v809_v13 = vadd.f32 %v808_v17, %v736_v30 }
 0x13d   :  { %v943_v37 = vpop.f32.mrf.mxu1  ;;  %v850_v39 = vadd.f32 %v849_v56, %v809_v13 }
 0x13e   :  { %v880_v36 = vpop.f32.mrf.mxu0  ;;  %v977_v15 = vpop.f32.mrf.mxu2 }
 0x13f   :  { %v881_v21 = vadd.f32 %v880_v36, %v846_v61 }
 0x141   :  { %v940_v59 = vadd.f32 %v939_v20, %v881_v21  ;;  %v1011_v54 = vpop.f32.mrf.mxu3 }
 0x143   :  { %v978_v24 = vadd.f32 %v977_v15, %v940_v59 }
 0x145   :  { %v1012_v47 = vadd.f32 %v1011_v54, %v978_v24  ;;  %v1087_v63 = vpop.f32.mrf.mxu1 }
 0x146   :  { %v888_v12 = vpop.f32.mrf.mxu0  ;;  %v982_v51 = vpop.f32.mrf.mxu2 }
 0x147   :  { %v889_v46 = vadd.f32 %v888_v12, %v850_v39 }
 0x149   :  { %v944_v0 = vadd.f32 %v943_v37, %v889_v46  ;;  %v1017_v32 = vpop.f32.mrf.mxu3 }
 0x14b   :  { %v983_v3 = vadd.f32 %v982_v51, %v944_v0 }
 0x14d   :  { %v1018_v33 = vadd.f32 %v1017_v32, %v983_v3  ;;  %v1091_v40 = vpop.f32.mrf.mxu1 }
 0x14e   :  { %v1056_v31 = vpop.f32.mrf.mxu0 }
 0x14f   :  { %v1057_v5 = vadd.f32 %v1056_v31, %v1012_v47 }
 0x151   :  { %v1088_v57 = vadd.f32 %v1087_v63, %v1057_v5 }
 0x153   :  { %1294 = vmatmul.msk.f32.vlgmr.msra.gmra.mxu2 %vm1120_vm3, %v1088_v57 }
 0x156   :  { %v1060_v42 = vpop.f32.mrf.mxu0 }
 0x157   :  { %v1061_v7 = vadd.f32 %v1060_v42, %v1018_v33 }
 0x159   :  { %v1092_v18 = vadd.f32 %v1091_v40, %v1061_v7 }
 0x15b   :  { %1295 = vmatmul.msk.f32.gmra.mxu2 %vm1120_vm3, %v1092_v18 }
 0x18c   :  { %v1220_v10 = vpop.permute.xlu2 %1219 }
 0x1d6   :  { %v1144_v62 = vpop.f32.mrf.mxu2 }
 0x1d7   :  { %v1145_v52 = vadd.f32 %v1318_v49, %v1144_v62 }
 0x1d9   :  { %v1150_v38 = vmax.f32 %v1145_v52, 0.0 }
 0x1db   :  { %1296 = vmatmul.msk.f32.vlgmr.msra.gmra.mxu3 %vm1120_vm3, %v1150_v38 }
 0x1de   :  { %v1147_v11 = vpop.f32.mrf.mxu2 }
 0x1df   :  { %v1148_v55 = vadd.f32 %v1318_v49, %v1147_v11 }
 0x1e1   :  { %v1151_v58 = vmax.f32 %v1148_v55, 0.0 }
 0x1e3   :  { %1297 = vmatmul.msk.f32.gmra.mxu3 %vm1120_vm3, %v1151_v58 }
 0x25e   :  { %v1176_v14 = vpop.f32.mrf.mxu3 }
 0x25f   :  { %v1177_v53 = vadd.f32 %v1319_v9, %v1176_v14 }
 0x261   :  { %v1182_v2 = vmax.f32 %v1177_v53, 0.0 }
 0x263   :  { %1298 = vmatmul.msk.f32.vlgmr.msrb.gmra.mxu0 %vm1185_vm4, %v1182_v2 }
 0x266   :  { %v1179_v34 = vpop.f32.mrf.mxu3 }
 0x267   :  { %v1180_v50 = vadd.f32 %v1319_v9, %v1179_v34 }
 0x269   :  { %v1183_v26 = vmax.f32 %v1180_v50, 0.0 }
 0x26b   :  { %1299 = vmatmul.msk.f32.vlgmr.msrb.gmra.mxu2 %vm1185_vm4, %v1183_v26 }
 0x2e0   :  { %v1209_v22 = vpop.f32.mrf.mxu0 }
 0x2e1   :  { %v1210_v19 = vadd.f32 %v1320_v60, %v1209_v22 }
 0x2e3   :  { %v1215_v25 = vmax.f32 %v1210_v19, 0.0 }
 0x2ee   :  { %v1212_v4 = vpop.f32.mrf.mxu2 }
 0x2ef   :  { %v1213_v45 = vadd.f32 %v1320_v60, %v1212_v4 }
 0x2f1   :  { %v1216_v20 = vmax.f32 %v1213_v45, 0.0 }
 0x2f3   :  { %1300 = vmatpush.xpose.msk.msrb.mxu1 %vm1222_vm5, %v1216_v20 }
 0x2f7   :  { %1301 = vmatpush.xpose.msk.msrb.mxu1 %vm1222_vm5, %v1215_v25 }
 0x2fa   :  { %1302 = vmatmul.msk.f32.vlgmr.msrb.gmra.mxu1 %vm1222_vm5, %v1117_v48 }
 0x377   :  { %v1249_v16 = vpop.f32.mrf.mxu1 }
 0x378   :  { %v1250_v17 = vadd.f32 %v1249_v16, %v1220_v10 }
 0x37a   :  { %1253 = vst.msk [vmem:[#allocation2] sm:$0x1] %vm1252_vm6, %v1250_v17 }
 0x37b   :  { %1264 = dma.vmem_to_hbm [thread:$0]  %s1260_s28, 16, %s1262_s4, [#allocation3]  }
 0x37c   :  { %1345 = dma.done.wait [#allocation3], 16  }
 0x37d   :  { %1346 = vsyncadd [#allocation3], 4294967280 }
 0x37e   :  { %1269 = vsyncpa [#allocation3], 1 }

</bundles_post_ra>
